<compile_context>
chip_gen: v6e
topology: v6e:2x2x1
jax: 0.10.0
libtpu: 0.0.40
codegen_flags: <defaults>
</compile_context>

<pallas_src>
import functools
import math

import jax
import jax.numpy as jnp
from jax.experimental import pallas as pl
from jax.experimental.pallas import tpu as pltpu


def _round_up(v, m):
    return -(-v // m) * m


def _pick_tm(m):
    """Largest nice M-tile that still exposes >=2 blocks (v7x dual-TC)."""
    if m % 8 != 0:
        return m                        # tiny M (time-MLP M=B): full-extent block
    for c in (256, 128, 64, 32, 16, 8):
        if m % c == 0 and m // c >= 2:
            return c
    return m


def _pick_tn(n):
    if n % 128 == 0:
        return 256 if n % 256 == 0 else 128
    return n                            # full-extent lane block (masked stores)


# --------------------------- matmul + fused epilogue ---------------------------
# Single K-step GEMM: bf16 operands, f32 accumulate on the MXU, bias (+ optional
# residual, + optional SiLU) fused into the epilogue.  No accumulator scratch.

def _mm_kernel(a_ref, b_ref, bias_ref, o_ref, *, act):
    y = jnp.dot(a_ref[...], b_ref[...], preferred_element_type=jnp.float32)
    y = y + bias_ref[...]
    if act == "silu":
        y = y * jax.nn.sigmoid(y)
    o_ref[...] = y.astype(o_ref.dtype)


def _mm_res_kernel(a_ref, b_ref, bias_ref, r_ref, o_ref, *, act):
    y = jnp.dot(a_ref[...], b_ref[...], preferred_element_type=jnp.float32)
    y = y + bias_ref[...] + r_ref[...].astype(jnp.float32)
    if act == "silu":
        y = y * jax.nn.sigmoid(y)
    o_ref[...] = y.astype(o_ref.dtype)


def pallas_matmul_bias(a, b, bias, *, residual=None, act=None,
                       out_dtype=jnp.bfloat16):
    """C = act(A @ B + bias [+ residual]).  B/bias are pre-padded at init."""
    m, ka = a.shape
    kb, n = b.shape
    if ka < kb:                                   # only the stem (27 -> 32)
        a = jnp.pad(a, ((0, 0), (0, kb - ka)))
    a = a.astype(jnp.bfloat16)

    tm = _pick_tm(m)
    tn = _pick_tn(n)
    # keep a single-K-step block set comfortably inside scoped VMEM
    while tm > 8 and tm % 16 == 0 and 2 * (tm * kb + kb * tn + 2 * tm * tn) * 2 > (6 << 20):
        tm //= 2
    gm, gn = m // tm, n // tn

    in_specs = [pl.BlockSpec((tm, kb), lambda i, j: (i, 0)),
                pl.BlockSpec((kb, tn), lambda i, j: (0, j)),
                pl.BlockSpec((1, tn), lambda i, j: (0, j))]
    args = [a, b, bias]
    if residual is not None:
        in_specs.append(pl.BlockSpec((tm, tn), lambda i, j: (i, j)))
        args.append(residual.astype(jnp.bfloat16))
        kernel = functools.partial(_mm_res_kernel, act=act)
    else:
        kernel = functools.partial(_mm_kernel, act=act)

    return pl.pallas_call(
        kernel,
        out_shape=jax.ShapeDtypeStruct((m, n), out_dtype),
        grid=(gm, gn),
        in_specs=in_specs,
        out_specs=pl.BlockSpec((tm, tn), lambda i, j: (i, j)),
        compiler_params=pltpu.CompilerParams(
            dimension_semantics=("parallel", "parallel")),
    )(*args)


# ------------------------------- GroupNorm(+SiLU) ------------------------------

def _gn_body(x, gamma, beta, groups, eps, apply_silu):
    hw, c = x.shape
    g = groups
    cg = c // g
    n = float(hw * cg)
    g_idx = jax.lax.broadcasted_iota(jnp.int32, (g, c), 0)
    c_idx = jax.lax.broadcasted_iota(jnp.int32, (g, c), 1)
    mask = (c_idx // cg == g_idx).astype(jnp.float32)        # (G, C) membership

    # single pass: per-channel sum and sum-of-squares, then group stats in f32
    s1 = jnp.sum(x, axis=0, keepdims=True)                   # (1, C)
    s2 = jnp.sum(x * x, axis=0, keepdims=True)               # (1, C)
    sum1_g = jnp.sum(mask * s1, axis=1, keepdims=True)       # (G, 1)
    sum2_g = jnp.sum(mask * s2, axis=1, keepdims=True)       # (G, 1)
    mean_g = sum1_g / n
    var_g = jnp.maximum(sum2_g / n - mean_g * mean_g, 0.0)
    mean_c = jnp.sum(mask * mean_g, axis=0, keepdims=True)                    # (1, C)
    inv_c = jnp.sum(mask * jax.lax.rsqrt(var_g + eps), axis=0, keepdims=True)  # (1, C)

    y = (x - mean_c) * inv_c * gamma + beta
    if apply_silu:
        y = y * jax.nn.sigmoid(y)
    return y


def _gn_kernel(x_ref, g_ref, b_ref, o_ref, *, groups, eps, apply_silu):
    x = x_ref[0].astype(jnp.float32)
    y = _gn_body(x, g_ref[...].astype(jnp.float32),
                 b_ref[...].astype(jnp.float32), groups, eps, apply_silu)
    o_ref[0] = y.astype(o_ref.dtype)


def _gn_add_kernel(x_ref, add_ref, g_ref, b_ref, o_ref, *, groups, eps, apply_silu):
    # additive per-batch bias (time embedding) fused in BEFORE the stats,
    # matching the reference "y += emb; GroupNorm(y)" ordering.
    x = x_ref[0].astype(jnp.float32) + add_ref[0].astype(jnp.float32)
    y = _gn_body(x, g_ref[...].astype(jnp.float32),
                 b_ref[...].astype(jnp.float32), groups, eps, apply_silu)
    o_ref[0] = y.astype(o_ref.dtype)


def pallas_groupnorm(x, gamma, beta, *, groups=32, eps=1e-5, apply_silu=False,
                     add=None, out_dtype=jnp.bfloat16):
    """GroupNorm (optionally + per-batch add and/or SiLU) over NHWC; grid over B."""
    b, h, w, c = x.shape
    hw = h * w
    x3 = x.reshape(b, hw, c)
    g2 = gamma.reshape(1, c).astype(jnp.float32)
    b2 = beta.reshape(1, c).astype(jnp.float32)
    cp = pltpu.CompilerParams(dimension_semantics=("parallel",))
    if add is None:
        y = pl.pallas_call(
            functools.partial(_gn_kernel, groups=groups, eps=eps,
                              apply_silu=apply_silu),
            out_shape=jax.ShapeDtypeStruct((b, hw, c), out_dtype),
            grid=(b,),
            in_specs=[pl.BlockSpec((1, hw, c), lambda i: (i, 0, 0)),
                      pl.BlockSpec((1, c), lambda i: (0, 0)),
                      pl.BlockSpec((1, c), lambda i: (0, 0))],
            out_specs=pl.BlockSpec((1, hw, c), lambda i: (i, 0, 0)),
            compiler_params=cp,
        )(x3, g2, b2)
    else:
        add3 = add.reshape(b, 1, c)
        y = pl.pallas_call(
            functools.partial(_gn_add_kernel, groups=groups, eps=eps,
                              apply_silu=apply_silu),
            out_shape=jax.ShapeDtypeStruct((b, hw, c), out_dtype),
            grid=(b,),
            in_specs=[pl.BlockSpec((1, hw, c), lambda i: (i, 0, 0)),
                      pl.BlockSpec((1, 1, c), lambda i: (i, 0, 0)),
                      pl.BlockSpec((1, c), lambda i: (0, 0)),
                      pl.BlockSpec((1, c), lambda i: (0, 0))],
            out_specs=pl.BlockSpec((1, hw, c), lambda i: (i, 0, 0)),
            compiler_params=cp,
        )(x3, add3, g2, b2)
    return y.reshape(b, h, w, c)


# ------------------------------ fused self-attention ---------------------------

def _attn_kernel(q_ref, k_ref, v_ref, o_ref, *, scale):
    q = q_ref[0]                                    # (L, C) bf16
    k = k_ref[0]
    v = v_ref[0]
    s = jax.lax.dot_general(q, k, (((1,), (1,)), ((), ())),
                            preferred_element_type=jnp.float32) * scale
    m = jnp.max(s, axis=-1, keepdims=True)
    e = jnp.exp(s - m)
    p = e * pl.reciprocal(jnp.sum(e, axis=-1, keepdims=True), approx=True)
    o = jnp.dot(p.astype(v.dtype), v, preferred_element_type=jnp.float32)
    o_ref[0] = o.astype(o_ref.dtype)


def pallas_attention(q, k, v, *, out_dtype=jnp.bfloat16):
    """Batched QK^T -> softmax -> PV in one pallas_call (grid over B, parallel)."""
    b, l, c = q.shape
    scale = 1.0 / math.sqrt(c)
    return pl.pallas_call(
        functools.partial(_attn_kernel, scale=scale),
        out_shape=jax.ShapeDtypeStruct((b, l, c), out_dtype),
        grid=(b,),
        in_specs=[pl.BlockSpec((1, l, c), lambda i: (i, 0, 0))] * 3,
        out_specs=pl.BlockSpec((1, l, c), lambda i: (i, 0, 0)),
        compiler_params=pltpu.CompilerParams(dimension_semantics=("parallel",)),
    )(q, k, v)


# ------------------------------ conv / linear glue ------------------------------

def _im2col_nhwc(x, kh, kw, stride, pad):
    b, h, w, c = x.shape
    if pad:
        x = jnp.pad(x, ((0, 0), (pad, pad), (pad, pad), (0, 0)))
    ho = (h + 2 * pad - kh) // stride + 1
    wo = (w + 2 * pad - kw) // stride + 1
    if kh == 1 and kw == 1 and stride == 1:
        col = x
    else:
        taps = []
        for i in range(kh):
            for j in range(kw):
                taps.append(x[:, i:i + stride * ho:stride,
                              j:j + stride * wo:stride, :])
        col = jnp.concatenate(taps, axis=-1)        # (B, Ho, Wo, kh*kw*C) bf16
    return col.reshape(b * ho * wo, kh * kw * c), ho, wo


def conv2d(x, p, *, stride=1, pad=1, act=None, residual=None,
           out_dtype=jnp.bfloat16):
    wf, bias = p['wf'], p['b']                      # (K8, N) bf16, (1, N) f32
    kh, kw = p['ksize']
    b = x.shape[0]
    col, ho, wo = _im2col_nhwc(x, kh, kw, stride, pad)
    res2 = None
    if residual is not None:
        res2 = residual.reshape(b * ho * wo, wf.shape[1])
    y = pallas_matmul_bias(col, wf, bias, residual=res2, act=act,
                           out_dtype=out_dtype)
    return y.reshape(b, ho, wo, wf.shape[1])


def linear(x, p, *, act=None, out_dtype=jnp.bfloat16):
    return pallas_matmul_bias(x, p['wf'], p['b'], act=act, out_dtype=out_dtype)


# ---------------------------- parameter initialization --------------------------

class _KeyGen:
    def __init__(self, seed):
        self._key = jax.random.PRNGKey(seed)

    def __call__(self):
        self._key, sub = jax.random.split(self._key)
        return sub


def _init_conv(kg, out_ch, in_ch, kh, kw, n_pad_to=None):
    bound = 1.0 / math.sqrt(in_ch * kh * kw)
    w = jax.random.uniform(kg(), (out_ch, in_ch, kh, kw), jnp.float32, -bound, bound)
    b = jax.random.uniform(kg(), (out_ch,), jnp.float32, -bound, bound)
    k = kh * kw * in_ch
    k8 = _round_up(k, 8)                            # sublane-aligned K, padded once
    wf = w.transpose(2, 3, 1, 0).reshape(k, out_ch)  # K ordering = (kh, kw, Cin)
    wf = jnp.pad(wf, ((0, k8 - k), (0, 0)))
    bias = b.reshape(1, out_ch)
    if n_pad_to is not None and out_ch < n_pad_to:   # final conv only: lane-dense N
        wf = jnp.pad(wf, ((0, 0), (0, n_pad_to - out_ch)))
        bias = jnp.pad(bias, ((0, 0), (0, n_pad_to - out_ch)))
    return {'wf': wf.astype(jnp.bfloat16), 'b': bias, 'ksize': (kh, kw)}


def _init_linear(kg, out_f, in_f):
    bound = 1.0 / math.sqrt(in_f)
    w = jax.random.uniform(kg(), (out_f, in_f), jnp.float32, -bound, bound)
    b = jax.random.uniform(kg(), (out_f,), jnp.float32, -bound, bound)
    return {'wf': w.T.astype(jnp.bfloat16), 'b': b.reshape(1, out_f)}


def _init_gn(ch):
    return {'gamma': jnp.ones((ch,), jnp.float32),
            'beta': jnp.zeros((ch,), jnp.float32)}


def _init_resblock(kg, in_ch, out_ch, emb_dim):
    return {'type': 'res',
            'gn1': _init_gn(in_ch),
            'conv1': _init_conv(kg, out_ch, in_ch, 3, 3),
            'emb_lin': _init_linear(kg, out_ch, emb_dim * 4),
            'gn2': _init_gn(out_ch),
            'conv2': _init_conv(kg, out_ch, out_ch, 3, 3),
            'shortcut': (_init_conv(kg, out_ch, in_ch, 1, 1)
                         if in_ch != out_ch else None)}


def _init_attn(kg, ch):
    q = _init_conv(kg, ch, ch, 1, 1)
    k = _init_conv(kg, ch, ch, 1, 1)
    v = _init_conv(kg, ch, ch, 1, 1)
    # q/k/v fused along N at init -> one GEMM with N = 3C
    qkv = {'wf': jnp.concatenate([q['wf'], k['wf'], v['wf']], axis=1),
           'b': jnp.concatenate([q['b'], k['b'], v['b']], axis=1),
           'ksize': (1, 1)}
    return {'type': 'attn', 'gn': _init_gn(ch), 'qkv': qkv,
            'o': _init_conv(kg, ch, ch, 1, 1)}


def _init_down(kg, ch):
    return {'type': 'down', 'conv': _init_conv(kg, ch, ch, 3, 3)}


def _init_up(kg, ch):
    return {'type': 'up', 'conv': _init_conv(kg, ch, ch, 3, 3)}


def init_unet(seed, input_shape, time_steps, channels, num_res_blocks,
              ch_mults=(1, 2, 4), attn_res=(16, 8, 4)):
    kg = _KeyGen(seed)
    emb_dim = channels

    pos = jnp.arange(time_steps, dtype=jnp.float32)
    log_emb = (-jnp.arange(0, emb_dim, 2, dtype=jnp.float32)
               / emb_dim * jnp.log(jnp.float32(10000.0)))
    freqs = jnp.exp(log_emb)[None, :] * pos[:, None]
    table = jnp.concatenate([jnp.sin(freqs), jnp.cos(freqs)], axis=-1)

    params = {
        'time_emb': {'table': table,
                     'lin1': _init_linear(kg, emb_dim * 4, emb_dim),
                     'lin2': _init_linear(kg, emb_dim * 4, emb_dim * 4)},
        'stem': _init_conv(kg, channels, input_shape[0], 3, 3),
    }

    down = []
    curr_res = input_shape[1]
    curr_ch = channels
    ch_buffer = [channels]
    for i, mult in enumerate(ch_mults):
        out_ch = channels * mult
        for _ in range(num_res_blocks):
            down.append(_init_resblock(kg, curr_ch, out_ch, channels))
            curr_ch = out_ch
            ch_buffer.append(curr_ch)
            if curr_res in attn_res:
                down.append(_init_attn(kg, curr_ch))
        if i != len(ch_mults) - 1:
            down.append(_init_down(kg, curr_ch))
            ch_buffer.append(curr_ch)
            curr_res //= 2
    params['down'] = down

    params['middle'] = [_init_resblock(kg, curr_ch, curr_ch, channels),
                        _init_attn(kg, curr_ch),
                        _init_resblock(kg, curr_ch, curr_ch, channels)]

    up = []
    for i, mult in enumerate(reversed(ch_mults)):
        out_ch = channels * mult
        for _ in range(num_res_blocks + 1):
            up.append(_init_resblock(kg, curr_ch + ch_buffer.pop(), out_ch, channels))
            curr_ch = out_ch
            if curr_res in attn_res:
                up.append(_init_attn(kg, curr_ch))
        if i != len(ch_mults) - 1:
            up.append(_init_up(kg, curr_ch))
            curr_res *= 2
    params['up'] = up

    params['out'] = {'gn': _init_gn(curr_ch),
                     'conv': _init_conv(kg, input_shape[0], curr_ch, 1, 1,
                                        n_pad_to=128),
                     'out_ch': input_shape[0]}
    return params


# -------------------------------- block forwards --------------------------------

def resblock_fwd(p, x, emb_silu):
    y = pallas_groupnorm(x, p['gn1']['gamma'], p['gn1']['beta'], apply_silu=True)
    y = conv2d(y, p['conv1'], stride=1, pad=1)
    # pos_emb_block = SiLU -> Linear; the SiLU was fused into the time MLP (emb_silu)
    e = linear(emb_silu, p['emb_lin'])                         # (B, out_ch)
    # "+ emb" fused into GroupNorm2 (added before the stats, as in the reference)
    y = pallas_groupnorm(y, p['gn2']['gamma'], p['gn2']['beta'],
                         apply_silu=True, add=e)
    # TODO(synk): nn.Dropout(0.1) treated as eval-mode identity (deterministic fwd).
    sc = conv2d(x, p['shortcut'], stride=1, pad=0) if p['shortcut'] is not None else x
    # "+ shortcut" fused into conv2's matmul epilogue
    return conv2d(y, p['conv2'], stride=1, pad=1, residual=sc)


def attn_fwd(p, x):
    b, h, w, c = x.shape
    hn = pallas_groupnorm(x, p['gn']['gamma'], p['gn']['beta'], apply_silu=False)
    qkv = conv2d(hn, p['qkv'], stride=1, pad=0).reshape(b, h * w, 3 * c)
    q, k, v = qkv[..., :c], qkv[..., c:2 * c], qkv[..., 2 * c:]
    o = pallas_attention(q, k, v).reshape(b, h, w, c)
    # "+ x" fused into the output projection's matmul epilogue
    return conv2d(o, p['o'], stride=1, pad=0, residual=x)


def downsample_fwd(p, x):
    return conv2d(x, p['conv'], stride=2, pad=1)


def upsample_fwd(p, x):
    x = jnp.repeat(jnp.repeat(x, 2, axis=1), 2, axis=2)    # nearest, scale 2 (NHWC)
    return conv2d(x, p['conv'], stride=1, pad=1)


def time_embedding_fwd(p, time):
    e = jnp.take(p['table'], time, axis=0)            # frozen sinusoidal embedding
    e = linear(e, p['lin1'], act='silu')               # Linear -> SiLU (reference)
    # The reference time MLP ends in a plain Linear; every consumer (ResBlock
    # pos_emb_block) applies SiLU first, so emit silu(lin2(...)) once here and
    # the ResBlocks apply only their Linear.  Exactly equivalent.
    e = linear(e, p['lin2'], act='silu')
    return e


_BLOCK_FWD = {'res': resblock_fwd,
              'attn': lambda p, x, emb: attn_fwd(p, x),
              'down': lambda p, x, emb: downsample_fwd(p, x),
              'up': lambda p, x, emb: upsample_fwd(p, x)}


def unet_forward(params, x, time):
    emb_silu = time_embedding_fwd(params['time_emb'], time)
    x = x.transpose(0, 2, 3, 1).astype(jnp.bfloat16)   # NCHW -> NHWC once
    x = conv2d(x, params['stem'], stride=1, pad=1)
    xs = [x]
    for blk in params['down']:
        x = _BLOCK_FWD[blk['type']](blk, x, emb_silu)
        if blk['type'] != 'attn':
            xs.append(x)
    for blk in params['middle']:
        x = _BLOCK_FWD[blk['type']](blk, x, emb_silu)
    for blk in params['up']:
        if blk['type'] == 'res':
            x = jnp.concatenate([x, xs.pop()], axis=-1)
        x = _BLOCK_FWD[blk['type']](blk, x, emb_silu)
    x = pallas_groupnorm(x, params['out']['gn']['gamma'],
                         params['out']['gn']['beta'], apply_silu=True)
    x = conv2d(x, params['out']['conv'], stride=1, pad=0, out_dtype=jnp.float32)
    x = x[..., :params['out']['out_ch']]               # only slice in the network
    return x.transpose(0, 3, 1, 2)                     # back to NCHW


# ------------------------------------- main --------------------------------------

if __name__ == "__main__":
    INPUT_SHAPE = (3, 16, 16)       # (C, H, W), H divisible by 2**len(ch_mults)
    TIME_STEPS = 100
    CHANNELS = 32                   # GroupNorm(32, ch) requires multiples of 32
    B = 2
    NUM_RES_BLOCKS = 1

    params = init_unet(seed=0, input_shape=INPUT_SHAPE, time_steps=TIME_STEPS,
                       channels=CHANNELS, num_res_blocks=NUM_RES_BLOCKS)

    key = jax.random.PRNGKey(0)
    kx, kt = jax.random.split(key)
    x = jax.random.normal(kx, (B,) + INPUT_SHAPE, jnp.float32)
    time = jax.random.randint(kt, (B,), 0, TIME_STEPS, jnp.int32)

    y = unet_forward(params, x, time)
    y = jax.block_until_ready(y)
    assert y.shape == (B,) + INPUT_SHAPE, y.shape
    assert bool(jnp.all(jnp.isfinite(y)))
    print("KERNEL_OK")
</pallas_src>

<mosaic_0001>
module attributes {stable_mosaic.version = 11 : i64} {
  func.func @_mm_kernel(%arg0: i32, %arg1: i32, %arg2: memref<2x32xbf16, #tpu.memory_space<vmem>>, %arg3: memref<32x128xbf16, #tpu.memory_space<vmem>>, %arg4: memref<1x128xf32, #tpu.memory_space<vmem>>, %arg5: memref<2x128xbf16, #tpu.memory_space<vmem>>) attributes {dimension_semantics = [#tpu.dimension_semantics<parallel>, #tpu.dimension_semantics<parallel>], iteration_bounds = array<i64: 1, 1>, scalar_prefetch = 0 : i64, scratch_operands = 0 : i64, tpu.core_type = #tpu.core_type<tc>, window_params = [{transform_indices = @transform_0, window_bounds = array<i64: 2, 32>}, {transform_indices = @transform_1, window_bounds = array<i64: 32, 128>}, {transform_indices = @transform_2, window_bounds = array<i64: 1, 128>}, {transform_indices = @transform_3, window_bounds = array<i64: 2, 128>}]} {
    %c0 = arith.constant 0 : index
    %c0_0 = arith.constant 0 : index
    %0 = vector.load %arg2[%c0, %c0_0] : memref<2x32xbf16, #tpu.memory_space<vmem>>, vector<2x32xbf16>
    %c0_1 = arith.constant 0 : index
    %c0_2 = arith.constant 0 : index
    %1 = vector.load %arg3[%c0_1, %c0_2] : memref<32x128xbf16, #tpu.memory_space<vmem>>, vector<32x128xbf16>
    %cst = arith.constant dense<0.000000e+00> : vector<2x128xf32>
    %2 = tpu.matmul %0, %1, %cst {dimension_numbers = #tpu.dot_dimension_numbers<[1], [0], [0], [1], [0, 0, 1, 1], [], []>} : vector<2x32xbf16>, vector<32x128xbf16>, vector<2x128xf32> -> vector<2x128xf32>
    %c0_3 = arith.constant 0 : index
    %c0_4 = arith.constant 0 : index
    %3 = vector.load %arg4[%c0_3, %c0_4] : memref<1x128xf32, #tpu.memory_space<vmem>>, vector<1x128xf32>
    %4 = vector.broadcast %3 : vector<1x128xf32> to vector<2x128xf32>
    %5 = arith.addf %2, %4 : vector<2x128xf32>
    %6 = arith.negf %5 : vector<2x128xf32>
    %7 = math.exp %6 : vector<2x128xf32>
    %cst_5 = arith.constant 1.000000e+00 : f32
    %8 = vector.broadcast %cst_5 : f32 to vector<2x128xf32>
    %9 = arith.addf %8, %7 : vector<2x128xf32>
    %10 = arith.divf %8, %9 : vector<2x128xf32>
    %11 = arith.mulf %5, %10 : vector<2x128xf32>
    %12 = arith.truncf %11 : vector<2x128xf32> to vector<2x128xbf16>
    %c0_6 = arith.constant 0 : index
    %c0_7 = arith.constant 0 : index
    %13 = vector.load %arg5[%c0_6, %c0_7] : memref<2x128xbf16, #tpu.memory_space<vmem>>, vector<2x128xbf16>
    tpu.vector_store %arg5[%c0_6, %c0_7], %12 {strides = array<i32>} : memref<2x128xbf16, #tpu.memory_space<vmem>>, vector<2x128xbf16>,
    return
  }
  func.func @transform_0(%arg0: i32, %arg1: i32) -> (i32, i32) {
    %c0_i32 = arith.constant 0 : i32
    %c0_i32_0 = arith.constant 0 : i32
    return %arg0, %c0_i32 : i32, i32
  }
  func.func @transform_1(%arg0: i32, %arg1: i32) -> (i32, i32) {
    %c0_i32 = arith.constant 0 : i32
    %c0_i32_0 = arith.constant 0 : i32
    return %c0_i32, %arg1 : i32, i32
  }
  func.func @transform_2(%arg0: i32, %arg1: i32) -> (i32, i32) {
    %c0_i32 = arith.constant 0 : i32
    %c0_i32_0 = arith.constant 0 : i32
    return %c0_i32, %arg1 : i32, i32
  }
  func.func @transform_3(%arg0: i32, %arg1: i32) -> (i32, i32) {
    %c0_i32 = arith.constant 0 : i32
    return %arg0, %arg1 : i32, i32
  }
}

</mosaic_0001>

<bundles_post_ra>
// kernel: tpu_custom_call.1
= control target key start
LH: loop header
LB: loop body
LE: loop exit
PB: predicated region body
PF: predicated region fallthrough
CT: control target
= control target key end

     0   :  { %8 = vsyncpa [#allocation3], 0  ;;  %s269_s0 = inlined_call_operand.hbm [shape: bf16[2,32], index: 0, kind: input, shape index: {}]   ;;  %s270_s1 = inlined_call_operand.hbm [shape: bf16[32,128], index: 1, kind: input, shape index: {}]   ;;  %s271_s2 = inlined_call_operand.vmem [shape: f32[1,128], index: 2, kind: input, shape index: {}]   ;;  %s272_s3 = inlined_call_operand.hbm [shape: bf16[2,128], index: 3, kind: output, shape index: {}]  }
   0x1   :  { %9 = vsyncpa [#allocation6], 0 }
   0x2   :  { %10 = vsyncpa [#allocation4], 0  ;;  %s230_s12 = smov [#allocation2]   ;;  %s231_s14 = smov [#allocation5]  }
   0x3   :  { %s17_s13 = sshll.u32 %s230_s12, 4  ;;  %s26_s15 = sshll.u32 %s231_s14, 4  ;;  %s18_s13 = int_to_ptr.vmem [resolvable:$true] %s17_s13  ;;  %s27_s15 = int_to_ptr.vmem [resolvable:$true] %s26_s15 }
   0x4   :  { %s172_s16 = scalar_lea.vmem %s18_s13, 16  ;;  %s176_s17 = scalar_lea.vmem %s18_s13, 32 }
   0x5   :  { %p173_p0 = scmp.ne.s32.totalorder %s18_s13, %s172_s16  ;;  %p177_p1 = scmp.lt.s32.totalorder %s18_s13, %s18_s13 }
   0x6   :  { %p178_p2 = scmp.lt.s32.totalorder %s176_s17, %s172_s16 }
   0x8   :  { %p179_p3 = por %p178_p2, %p177_p1 }
   0xa   :  { %p180_p4 = pnand %p179_p3, %p173_p0 }
   0xc   :  { %183 = shalt.err (!%p180_p4)
}
   0xd   :  { %20 = dma.hbm_to_vmem [thread:$0]  %s269_s0, 16, %s18_s13, [#allocation3]  }
   0xe   :  { %s192_s20 = scalar_lea.vmem %s27_s15, 256  ;;  %p197_p6 = scmp.lt.s32.totalorder %s27_s15, %s27_s15 }
   0xf   :  { %p193_p5 = scmp.ne.s32.totalorder %s27_s15, %s192_s20  ;;  %p198_p7 = scmp.lt.s32.totalorder %s192_s20, %s192_s20 }
  0x11   :  { %p199_p8 = por %p198_p7, %p197_p6 }
  0x13   :  { %p200_p9 = pnand %p199_p8, %p193_p5 }
  0x15   :  { %203 = shalt.err (!%p200_p9)
}
  0x16   :  { %s232_s21 = smov 64   ;;  %s233_s22 = smov 4  }
  0x17   :  { %32 = dma.hbm_to_vmem [thread:$0]  %s270_s1, 256, %s27_s15, [#allocation6], %s232_s21, %s232_s21, %s233_s22  }
  0x18   :  { %224 = dma.done.wait [#allocation3], 16  }
  0x19   :  { %225 = vsyncadd [#allocation3], 4294967280 }
  0x1a   :  { %226 = dma.done.wait [#allocation6], 256  }
  0x1b   :  { %227 = vsyncadd [#allocation6], 4294967040  ;;  %v234_v0 = vmov 0.0   ;;  %vm235_vm0 = vmmov 0   ;;  %v158_v1 = vld [vmem:[#allocation5 + $0x8] sm:$0xff]   ;;  %v159_v2 = vld [vmem:[#allocation5] sm:$0xff]  }
  0x1c   :  { %143 = vmatprep.subr.bf16.mxu0 %v234_v0  ;;  %147 = vmatprep.mubr.msk.bf16.mxu0 %vm235_vm0, %v234_v0  ;;  %v42_v3 = vld [vmem:[#allocation2] sm:$0x1]  ;;  %vm66_vm1 = vcmask 261120   ;;  %s236_s1 = smov [#allocation7]  }
  0x1d   :  { %144 = vmatpush3.bf16.msra.mxu0 %v158_v1  ;;  %v135_v4 = vld [vmem:[%s271_s2] ss:$0 sm:$0xff]  ;;  %s125_s26 = sshll.u32 %s236_s1, 4  ;;  %s126_s26 = int_to_ptr.vmem [resolvable:$true] %s125_s26 }
  0x1e   :  { %145 = vmatprep.subr.bf16.mxu0 %v234_v0  ;;  %s204_s27 = scalar_lea.vmem %s126_s26, 16  ;;  %s208_s2 = scalar_lea.vmem %s126_s26, 32 }
  0x1f   :  { %p205_p10 = scmp.ne.s32.totalorder %s126_s26, %s204_s27  ;;  %p209_p11 = scmp.lt.s32.totalorder %s126_s26, %s126_s26 }
  0x20   :  { %p210_p12 = scmp.lt.s32.totalorder %s208_s2, %s204_s27 }
  0x21   :  { %146 = vmatpush3.bf16.msra.mxu0 %v159_v2 }
  0x22   :  { %p211_p13 = por %p210_p12, %p209_p11 }
  0x24   :  { %148 = vmatmul.mubr.msk.bf16.vlgmr.msra.gmra.mxu0 %vm66_vm1, %v42_v3  ;;  %p212_p0 = pnand %p211_p13, %p205_p10 }
  0xe4   :  { %v104_v5 = vpop.f32.mrf.mxu0 }
  0xe5   :  { %v105_v6 = vadd.f32 %v135_v4, %v104_v5 }
  0xe6   :  { %v149_v7 = vpop.f32.mrf.mxu0 }
  0xe7   :  { %v139_v8 = vmul.f32 -1.442695, %v105_v6 }
  0xe8   :  { %v107_v9 = vpop.f32.mrf.mxu0 }
  0xe9   :  { %160 = vpow2.f32 %v139_v8 }
  0xea   :  { %v150_v10 = vpop.f32.mrf.mxu0 }
  0xf6   :  { %v161_v11 = vpop.eup %160 }
  0xf7   :  { %v113_v12 = vadd.f32 1.0, %v161_v11 }
  0xf9   :  { %162 = vrcp.f32 %v113_v12 }
 0x106   :  { %v163_v13 = vpop.eup %162 }
 0x107   :  { %v116_v14 = vmul.f32 %v163_v13, %v105_v6 }
 0x109   :  { %v117_v15 = vpack.c.bf16 %v116_v14, %v116_v14 }
 0x10b   :  { %118 = vst [vmem:[#allocation7] sm:$0x1] %v117_v15 }
 0x10c   :  { %215 = shalt.err (!%p212_p0)
}
 0x10d   :  { %128 = dma.vmem_to_hbm [thread:$0]  %s126_s26, 16, %s272_s3, [#allocation4]  }
 0x10e   :  { %228 = dma.done.wait [#allocation4], 16  }
 0x10f   :  { %229 = vsyncadd [#allocation4], 4294967280 }
 0x110   :  { %132 = vsyncpa [#allocation3], 1 }
 0x111   :  { %133 = vsyncpa [#allocation6], 1 }
 0x112   :  { %134 = vsyncpa [#allocation4], 1 }

</bundles_post_ra>
